<compile_context>
chip_gen: v7x
topology: tpu7x:2x2x1
jax: 0.10.0
libtpu: 0.0.40
codegen_flags: <defaults>
</compile_context>

<pallas_src>
import math

import jax
import jax.numpy as jnp
import numpy as np
from jax.experimental import pallas as pl
from jax.experimental.pallas import tpu as pltpu


_NEG_BIG = -1.0e30  # finite "masked" logit: exp(x - _NEG_BIG) never NaNs


# ----------------------------------------------------------------------------
# hardware-generation config (tiles + scoped-VMEM request)
# ----------------------------------------------------------------------------
_CFG = None


def _hw_config():
    global _CFG
    if _CFG is None:
        try:
            vmem_phys = int(pltpu.get_tpu_info().vmem_capacity_bytes)
        except Exception:
            vmem_phys = 64 << 20  # conservative (v7x-sized) fallback
        if vmem_phys >= (128 << 20):
            # v5e / v6e: 128 MiB VMEM -> big tiles, generous scoped limit.
            _CFG = dict(tm=512, tn=1024, tk=1024, tq=128, tkv=256,
                        vmem_limit=100 << 20)
        else:
            # v7x (64 MiB physical) or unknown: leave compiler headroom.
            _CFG = dict(tm=256, tn=512, tk=512, tq=128, tkv=256,
                        vmem_limit=48 << 20)
    return _CFG


# ----------------------------------------------------------------------------
# small helpers
# ----------------------------------------------------------------------------
def _round_up(x, m):
    return (x + m - 1) // m * m


def _tile(dim, pref, align):
    """Pick (tile, padded_dim): tile | padded_dim, tile % align == 0, tile <= pref
    when dim > pref (equal-sized blocks, minimal padding)."""
    padded = _round_up(dim, align)
    if padded <= pref:
        return padded, padded
    nblocks = -(-padded // pref)
    t = _round_up(-(-padded // nblocks), align)
    return t, t * nblocks


def _pick_period_tile(period, pref):
    """Largest 16-multiple <= pref dividing `period` (for wrapped residual rows)."""
    best, t = None, 16
    while t <= min(period, pref):
        if period % t == 0:
            best = t
        t += 16
    return best


def _pad2(a, rows, cols):
    pr, pc = rows - a.shape[0], cols - a.shape[1]
    if pr == 0 and pc == 0:
        return a
    return jnp.pad(a, ((0, pr), (0, pc)))


# ----------------------------------------------------------------------------
# Tiled linear kernel: y = LNout?(act(LNin?(x) @ w + b) (+ residual))
# ----------------------------------------------------------------------------
def _make_linear_kernel(*, activation, has_res, has_ln, cache_ln, has_ln_out,
                        k_true, k_pad, n_true, n_pad):
    inv_k = 1.0 / float(k_true)
    inv_n = 1.0 / float(n_true)
    k_masked = k_pad != k_true
    n_masked = n_pad != n_true

    def _layernorm_rows(xf, g, b, inv, masked, true_cols):
        # Two-pass LN (E[(x-mu)^2]) with static masking of zero-padded columns.
        if masked:
            cm = jax.lax.broadcasted_iota(jnp.int32, (1, xf.shape[-1]), 1) < true_cols
            xf = jnp.where(cm, xf, 0.0)
        mu = jnp.sum(xf, axis=-1, keepdims=True) * inv
        d = xf - mu
        if masked:
            d = jnp.where(cm, d, 0.0)
        var = jnp.sum(d * d, axis=-1, keepdims=True) * inv
        return d * jax.lax.rsqrt(var + 1e-5) * g + b

    def kernel(*refs):
        x_ref, w_ref, b_ref = refs[0], refs[1], refs[2]
        idx = 3
        if has_ln:
            g_ref, be_ref = refs[idx], refs[idx + 1]
            idx += 2
        if has_res:
            r_ref = refs[idx]
            idx += 1
        if has_ln_out:
            og_ref, ob_ref = refs[idx], refs[idx + 1]
            idx += 2
        o_ref = refs[idx]
        acc_ref = refs[idx + 1]
        xn_ref = refs[idx + 2] if cache_ln else None

        kk = pl.program_id(2)

        @pl.when(kk == 0)
        def _():
            acc_ref[...] = jnp.zeros_like(acc_ref)

        if has_ln:
            # Fused LayerNorm prologue (full K row in one tile). Padded K
            # columns become `beta`, but they hit zero-padded W rows -> no
            # contribution to the matmul.
            def _normalize():
                xf = x_ref[...].astype(jnp.float32)
                return _layernorm_rows(xf, g_ref[...], be_ref[...],
                                       inv_k, k_masked, k_true)

            if cache_ln:
                # Compute once per row tile (j == 0), reuse for every N tile.
                @pl.when(pl.program_id(1) == 0)
                def _():
                    xn_ref[...] = _normalize().astype(xn_ref.dtype)
                x = xn_ref[...]
            else:
                x = _normalize().astype(x_ref.dtype)
        else:
            x = x_ref[...]

        acc_ref[...] += jnp.dot(x, w_ref[...], preferred_element_type=jnp.float32)

        @pl.when(kk == pl.num_programs(2) - 1)
        def _():
            y = acc_ref[...] + b_ref[...].astype(jnp.float32)
            if activation == "gelu":
                # tanh GELU keeps the nonlinearity on the EUP slot; slight
                # numeric deviation from torch's default erf GELU.
                y = jax.nn.gelu(y, approximate=True)
            if has_res:
                y = y + r_ref[...].astype(jnp.float32)
            if has_ln_out:
                # Final LayerNorm fused into the epilogue (tn == n_pad, so the
                # whole output row is resident in the accumulator).
                y = _layernorm_rows(y, og_ref[...].astype(jnp.float32),
                                    ob_ref[...].astype(jnp.float32),
                                    inv_n, n_masked, n_true)
            o_ref[...] = y.astype(o_ref.dtype)

    return kernel


def pallas_linear(x, w, b, *, activation=None, residual=None, residual_period=None,
                  ln_gamma=None, ln_beta=None, ln_out_gamma=None, ln_out_beta=None,
                  out_dtype=jnp.bfloat16, cfg=None):
    """y = LNout?(act(LNin?(x) @ w + b) (+ residual)).  x:(M,K) w:(K,N) b:(1,N).

    residual_period: residual has shape (period, N) and is reused every
    `period` rows (positional embedding), fed through a modulo index_map.
    """
    cfg = cfg or _hw_config()
    M, K = x.shape
    K2, N = w.shape
    assert K == K2
    has_res = residual is not None
    has_ln = ln_gamma is not None
    has_ln_out = ln_out_gamma is not None

    # ---- tile selection -----------------------------------------------------
    if has_ln:
        tk = k_pad = _round_up(K, 128)        # LN prologue needs the full row
    else:
        tk, k_pad = _tile(K, cfg["tk"], 128)
    if has_ln_out:
        tn = n_pad = _round_up(N, 128)        # LN epilogue needs the full row
    else:
        tn, n_pad = _tile(N, cfg["tn"], 128)

    tm_p = None
    if has_res and residual_period is not None:
        tm_p = _pick_period_tile(residual_period, cfg["tm"])
        if tm_p is None:
            # TODO(synk): period has no 16-aligned divisor tile; fall back to
            # materializing the broadcast residual.
            residual = jnp.tile(residual, (M // residual_period, 1))
            residual_period = None
    if residual_period is not None:
        tm = tm_p
        m_pad = _round_up(M, tm)
        period_blocks = residual_period // tm
    else:
        tm, m_pad = _tile(M, cfg["tm"], 16)   # 16-aligned rows (bf16 packing)
        period_blocks = None

    n_tiles = n_pad // tn
    cache_ln = has_ln and n_tiles > 1

    # ---- operands (pads only emitted when actually needed) -------------------
    x_p = _pad2(x, m_pad, k_pad)
    w_p = _pad2(w, k_pad, n_pad)
    b_p = _pad2(b.reshape(1, N), 1, n_pad)

    in_specs = [
        pl.BlockSpec((tm, tk), lambda i, j, k: (i, k)),
        pl.BlockSpec((tk, tn), lambda i, j, k: (k, j)),
        pl.BlockSpec((1, tn), lambda i, j, k: (0, j)),
    ]
    args = [x_p, w_p, b_p]
    if has_ln:
        args += [_pad2(ln_gamma.reshape(1, K), 1, k_pad),
                 _pad2(ln_beta.reshape(1, K), 1, k_pad)]
        in_specs += [pl.BlockSpec((1, tk), lambda i, j, k: (0, k)),
                     pl.BlockSpec((1, tk), lambda i, j, k: (0, k))]
    if has_res:
        if residual_period is not None:
            pb = period_blocks

            def res_map(i, j, k):
                return (i % pb, j)

            args.append(_pad2(residual, residual_period, n_pad))
            in_specs.append(pl.BlockSpec((tm, tn), res_map))
        else:
            args.append(_pad2(residual, m_pad, n_pad))
            in_specs.append(pl.BlockSpec((tm, tn), lambda i, j, k: (i, j)))
    if has_ln_out:
        args += [_pad2(ln_out_gamma.reshape(1, N), 1, n_pad),
                 _pad2(ln_out_beta.reshape(1, N), 1, n_pad)]
        in_specs += [pl.BlockSpec((1, tn), lambda i, j, k: (0, j)),
                     pl.BlockSpec((1, tn), lambda i, j, k: (0, j))]

    scratch = [pltpu.VMEM((tm, tn), jnp.float32)]
    if cache_ln:
        scratch.append(pltpu.VMEM((tm, k_pad), x.dtype))

    kernel = _make_linear_kernel(
        activation=activation, has_res=has_res, has_ln=has_ln, cache_ln=cache_ln,
        has_ln_out=has_ln_out, k_true=K, k_pad=k_pad, n_true=N, n_pad=n_pad)

    # When the LN prologue is cached, the j axis must stay on one core so that
    # the j==0 block is guaranteed to have run before j>0 blocks of the same i.
    dim_sem = ("parallel", "arbitrary" if cache_ln else "parallel", "arbitrary")

    out = pl.pallas_call(
        kernel,
        out_shape=jax.ShapeDtypeStruct((m_pad, n_pad), out_dtype),
        grid=(m_pad // tm, n_tiles, k_pad // tk),
        in_specs=in_specs,
        out_specs=pl.BlockSpec((tm, tn), lambda i, j, k: (i, j)),
        scratch_shapes=scratch,
        compiler_params=pltpu.CompilerParams(
            dimension_semantics=dim_sem,
            vmem_limit_bytes=cfg["vmem_limit"]),
    )(*args)

    if m_pad != M or n_pad != N:
        out = out[:M, :N]
    return out


# ----------------------------------------------------------------------------
# Flash attention: heads on the grid, inputs/outputs laid out (B*H, S, dh)
# ----------------------------------------------------------------------------
def _attn_dims(S, cfg):
    tq_pref, tkv_pref = cfg["tq"], cfg["tkv"]   # 128 / 256; tkv_pref % tq_pref == 0
    if S <= tq_pref:
        s_pad = _round_up(S, 16)
        return s_pad, s_pad, s_pad
    s_pad = _round_up(S, tkv_pref)
    return s_pad, tq_pref, tkv_pref


def _make_flash_kernel(s_true, s_pad, tq, tkv, scale):
    need_mask = s_pad != s_true   # static: no mask work when S is tile-aligned

    def kernel(q_ref, k_ref, v_ref, o_ref, m_scr, l_scr, acc_scr):
        ki = pl.program_id(2)

        @pl.when(ki == 0)
        def _():
            m_scr[...] = jnp.full_like(m_scr, _NEG_BIG)
            l_scr[...] = jnp.zeros_like(l_scr)
            acc_scr[...] = jnp.zeros_like(acc_scr)

        q = q_ref[0]    # (tq, dh)   bf16
        k = k_ref[0]    # (tkv, dh)
        v = v_ref[0]    # (tkv, dh)

        # One head's (tq, tkv) f32 scores at a time; contraction over dh
        # without transposing k.
        s = jax.lax.dot_general(q, k, (((1,), (1,)), ((), ())),
                                preferred_element_type=jnp.float32) * scale
        if need_mask:
            col = jax.lax.broadcasted_iota(jnp.int32, (1, tkv), 1) + ki * tkv
            s = jnp.where(col < s_true, s, _NEG_BIG)

        m_prev = m_scr[...]
        m_new = jnp.maximum(m_prev, jnp.max(s, axis=-1, keepdims=True))
        alpha = jnp.exp(m_prev - m_new)           # finite even when fully masked
        p = jnp.exp(s - m_new)
        l_scr[...] = alpha * l_scr[...] + jnp.sum(p, axis=-1, keepdims=True)
        acc_scr[...] = alpha * acc_scr[...] + jnp.dot(
            p.astype(v.dtype), v, preferred_element_type=jnp.float32)
        m_scr[...] = m_new

        @pl.when(ki == pl.num_programs(2) - 1)
        def _():
            # exact division; l >= 1 always (at least one p entry equals 1)
            o_ref[0] = (acc_scr[...] / l_scr[...]).astype(o_ref.dtype)

    return kernel


def pallas_flash_attention(q, k, v, *, s_true, tq, tkv, cfg, out_dtype=jnp.bfloat16):
    """q/k/v: (B*H, s_pad, dh) -> (B*H, s_pad, dh)."""
    BH, s_pad, dh = q.shape
    assert s_pad % tq == 0 and s_pad % tkv == 0
    scale = 1.0 / math.sqrt(dh)
    kernel = _make_flash_kernel(s_true, s_pad, tq, tkv, scale)

    return pl.pallas_call(
        kernel,
        out_shape=jax.ShapeDtypeStruct((BH, s_pad, dh), out_dtype),
        # Leading (B*H) parallel axis gives enough blocks for 2 TCs on v7x.
        grid=(BH, s_pad // tq, s_pad // tkv),
        in_specs=[pl.BlockSpec((1, tq, dh), lambda bh, qi, ki: (bh, qi, 0)),
                  pl.BlockSpec((1, tkv, dh), lambda bh, qi, ki: (bh, ki, 0)),
                  pl.BlockSpec((1, tkv, dh), lambda bh, qi, ki: (bh, ki, 0))],
        out_specs=pl.BlockSpec((1, tq, dh), lambda bh, qi, ki: (bh, qi, 0)),
        scratch_shapes=[pltpu.VMEM((tq, 1), jnp.float32),   # running max m
                        pltpu.VMEM((tq, 1), jnp.float32),   # running sum l
                        pltpu.VMEM((tq, dh), jnp.float32)], # output accumulator
        compiler_params=pltpu.CompilerParams(
            dimension_semantics=("parallel", "parallel", "arbitrary"),
            vmem_limit_bytes=cfg["vmem_limit"]),
    )(q, k, v)


# ----------------------------------------------------------------------------
# Plain-JAX glue (im2col / positional embedding / parameter setup)
# ----------------------------------------------------------------------------
def im2col_1d(x_tc, kernel_size, stride, pad):
    """x_tc:(B,T,C) -> (B,T_out,C*K), (c,k) flattened to match torch weight.reshape(O,C*K)."""
    # TODO(synk): lower the convs as K-blocked shifted matmuls inside the tiled
    # linear kernel (avoids the 3x im2col expansion in HBM); kept in XLA here.
    B, T, C = x_tc.shape
    xp = jnp.pad(x_tc, ((0, 0), (pad, pad), (0, 0)))
    t_out = (T + 2 * pad - kernel_size) // stride + 1
    cols = [xp[:, k: k + stride * t_out: stride, :] for k in range(kernel_size)]
    patch = jnp.stack(cols, axis=-1)  # (B, T_out, C, K)
    return patch.reshape(B, t_out, C * kernel_size)


def sinusoids(length, channels, max_timescale=10000.0):
    half = channels // 2
    log_inc = math.log(max_timescale) / max(half - 1, 1)
    inv_timescales = jnp.exp(-log_inc * jnp.arange(half, dtype=jnp.float32))
    scaled = jnp.arange(length, dtype=jnp.float32)[:, None] * inv_timescales[None, :]
    return jnp.concatenate([jnp.sin(scaled), jnp.cos(scaled)], axis=1)


def init_params(key, n_mels, d_model, d_ff):
    ks = jax.random.split(key, 8)

    def w(k, shape, scale=0.02):
        return scale * jax.random.normal(k, shape, jnp.float32)

    return {
        # torch Conv1d weight layout: (out_c, in_c, K)
        "conv1_w": w(ks[0], (d_model, n_mels, 3)),
        "conv1_b": jnp.zeros((1, d_model), jnp.float32),
        "conv2_w": w(ks[1], (d_model, d_model, 3)),
        "conv2_b": jnp.zeros((1, d_model), jnp.float32),
        "ln1_g": jnp.ones((1, d_model), jnp.float32),
        "ln1_b": jnp.zeros((1, d_model), jnp.float32),
        # projection weights stored as (in, out) i.e. torch Linear weight transposed
        "q_w": w(ks[2], (d_model, d_model)),
        "q_b": jnp.zeros((1, d_model), jnp.float32),
        "k_w": w(ks[3], (d_model, d_model)),
        "k_b": jnp.zeros((1, d_model), jnp.float32),
        "v_w": w(ks[4], (d_model, d_model)),
        "v_b": jnp.zeros((1, d_model), jnp.float32),
        "o_w": w(ks[5], (d_model, d_model)),
        "o_b": jnp.zeros((1, d_model), jnp.float32),
        "ln2_g": jnp.ones((1, d_model), jnp.float32),
        "ln2_b": jnp.zeros((1, d_model), jnp.float32),
        "fc1_w": w(ks[6], (d_model, d_ff)),
        "fc1_b": jnp.zeros((1, d_ff), jnp.float32),
        "fc2_w": w(ks[7], (d_ff, d_model)),
        "fc2_b": jnp.zeros((1, d_model), jnp.float32),
        "lnf_g": jnp.ones((1, d_model), jnp.float32),
        "lnf_b": jnp.zeros((1, d_model), jnp.float32),
    }


# ----------------------------------------------------------------------------
# Forward pass
# ----------------------------------------------------------------------------
def audio_encoder_forward(params, input_features, n_heads):
    """Whisper-style encoder -> last_hidden_state (B, S, d_model)."""
    cfg = _hw_config()
    B, _, T = input_features.shape
    d_model = params["conv1_w"].shape[0]
    dh = d_model // n_heads
    cdt = jnp.bfloat16  # compute/storage dtype for MXU operands & activations

    # NCW -> time-major (B, T, C)
    x = jnp.transpose(input_features, (0, 2, 1))

    # conv1: k=3, stride=1, pad=1, fused GELU (im2col + tiled bf16 matmul)
    p1 = im2col_1d(x, 3, 1, 1).reshape(B * T, -1).astype(cdt)
    w1 = params["conv1_w"].reshape(d_model, -1).T.astype(cdt)
    h = pallas_linear(p1, w1, params["conv1_b"], activation="gelu",
                      out_dtype=cdt, cfg=cfg)

    # conv2: k=3, stride=2, pad=1, fused GELU + positional-embedding add
    # (positional table fed as (S, d_model) with a modulo index_map; no B-tile)
    h = h.reshape(B, T, d_model)
    p2 = im2col_1d(h, 3, 2, 1)
    S = p2.shape[1]
    p2 = p2.reshape(B * S, -1).astype(cdt)
    w2 = params["conv2_w"].reshape(d_model, -1).T.astype(cdt)
    pos = sinusoids(S, d_model)                                  # (S, D) f32
    hf = pallas_linear(p2, w2, params["conv2_b"], activation="gelu",
                       residual=pos, residual_period=S, out_dtype=cdt, cfg=cfg)

    # Pad the sequence once for the whole transformer block; padded KV rows are
    # masked inside attention; padded rows are sliced off at the end.
    s_pad, tq, tkv = _attn_dims(S, cfg)
    if s_pad != S:
        hf = jnp.pad(hf.reshape(B, S, d_model),
                     ((0, 0), (0, s_pad - S), (0, 0))).reshape(B * s_pad, d_model)

    # --- transformer encoder layer (pre-norm) ---
    # attention block: LN1 fused into the fused-QKV projection
    resid = hf
    qkv_w = jnp.concatenate(
        [params["q_w"], params["k_w"], params["v_w"]], axis=1).astype(cdt)
    qkv_b = jnp.concatenate(
        [params["q_b"], params["k_b"], params["v_b"]], axis=1)
    qkv = pallas_linear(hf, qkv_w, qkv_b,
                        ln_gamma=params["ln1_g"], ln_beta=params["ln1_b"],
                        out_dtype=cdt, cfg=cfg)                  # (B*s_pad, 3*D)

    # Head-major relayout (one HBM transpose per operand) so the flash kernel
    # never slices heads out of the lane dimension.
    qkv5 = qkv.reshape(B, s_pad, 3, n_heads, dh)
    def _head_major(i):
        return jnp.transpose(qkv5[:, :, i], (0, 2, 1, 3)).reshape(B * n_heads, s_pad, dh)
    q, k, v = _head_major(0), _head_major(1), _head_major(2)

    attn = pallas_flash_attention(q, k, v, s_true=S, tq=tq, tkv=tkv, cfg=cfg)
    attn = jnp.transpose(attn.reshape(B, n_heads, s_pad, dh),
                         (0, 2, 1, 3)).reshape(B * s_pad, d_model)

    hf = pallas_linear(attn, params["o_w"].astype(cdt), params["o_b"],
                       residual=resid, out_dtype=cdt, cfg=cfg)   # fused residual

    # MLP block: LN2 fused into fc1 (+GELU); residual AND the final encoder
    # LayerNorm fused into the fc2 epilogue (whole output row resident).
    resid = hf
    ff = pallas_linear(hf, params["fc1_w"].astype(cdt), params["fc1_b"],
                       activation="gelu",
                       ln_gamma=params["ln2_g"], ln_beta=params["ln2_b"],
                       out_dtype=cdt, cfg=cfg)
    hf = pallas_linear(ff, params["fc2_w"].astype(cdt), params["fc2_b"],
                       residual=resid,
                       ln_out_gamma=params["lnf_g"], ln_out_beta=params["lnf_b"],
                       out_dtype=jnp.float32, cfg=cfg)

    hf = hf.reshape(B, s_pad, d_model)
    if s_pad != S:
        hf = hf[:, :S, :]
    return hf


def audio_encoder_wrapper(params, input_features, seq_lengths=None, *, n_heads):
    """Mirrors AudioEncoderWrapper.forward."""
    hidden = audio_encoder_forward(params, input_features, n_heads)
    if seq_lengths is not None:
        # PyTorch: mask = arange(S)[None,:] < seq_lengths[:,None]; hidden[mask]
        # -> per-batch prefixes concatenated batch-major, done as ONE gather.
        # TODO(synk): the ragged boolean-mask gather has a data-dependent output
        # shape, so it cannot live inside a fixed-shape Pallas kernel / jit;
        # indices are built once on host from concrete lengths.
        B, S, D = hidden.shape
        lens = np.asarray(seq_lengths)
        idx = np.concatenate(
            [b * S + np.arange(int(l), dtype=np.int32) for b, l in enumerate(lens)])
        hidden = jnp.take(hidden.reshape(B * S, D), jnp.asarray(idx), axis=0)
    return hidden


# ----------------------------------------------------------------------------
# main
# ----------------------------------------------------------------------------
if __name__ == "__main__":
    B, n_mels, T = 2, 16, 32
    d_model, n_heads, d_ff = 128, 4, 256

    key = jax.random.PRNGKey(0)
    k_in, k_par = jax.random.split(key)
    input_features = jax.random.normal(k_in, (B, n_mels, T), jnp.float32)
    params = init_params(k_par, n_mels, d_model, d_ff)
    seq_lengths = np.array([12, 7], dtype=np.int32)  # S = T // 2 = 16 after conv2

    out = audio_encoder_wrapper(params, input_features, seq_lengths, n_heads=n_heads)
    out = jax.block_until_ready(out)

    assert out.shape == (int(seq_lengths.sum()), d_model), out.shape
    assert out.dtype == jnp.float32
    assert bool(jnp.all(jnp.isfinite(out)))
    print("KERNEL_OK")
</pallas_src>

<mosaic_0001>
module attributes {stable_mosaic.version = 11 : i64} {
  func.func @kernel(%arg0: i32, %arg1: i32, %arg2: i32, %arg3: memref<64x128xbf16, #tpu.memory_space<vmem>>, %arg4: memref<128x128xbf16, #tpu.memory_space<vmem>>, %arg5: memref<1x128xf32, #tpu.memory_space<vmem>>, %arg6: memref<64x128xbf16, #tpu.memory_space<vmem>>, %arg7: memref<64x128xf32, #tpu.memory_space<vmem>>) attributes {dimension_semantics = [#tpu.dimension_semantics<parallel>, #tpu.dimension_semantics<parallel>, #tpu.dimension_semantics<arbitrary>], iteration_bounds = array<i64: 1, 1, 1>, scalar_prefetch = 0 : i64, scratch_operands = 1 : i64, tpu.core_type = #tpu.core_type<tc>, window_params = [{transform_indices = @transform_0, window_bounds = array<i64: 64, 128>}, {transform_indices = @transform_1, window_bounds = array<i64: 128, 128>}, {transform_indices = @transform_2, window_bounds = array<i64: 1, 128>}, {transform_indices = @transform_3, window_bounds = array<i64: 64, 128>}]} {
    %c0_i32 = arith.constant 0 : i32
    %0 = arith.cmpi eq, %arg2, %c0_i32 : i32
    %1 = arith.extui %0 : i1 to i32
    %c0_i32_0 = arith.constant 0 : i32
    %2 = arith.cmpi ne, %1, %c0_i32_0 : i32
    scf.if %2 {
      %cst_10 = arith.constant 0.000000e+00 : f32
      %12 = vector.broadcast %cst_10 : f32 to vector<64x128xf32>
      %c0_11 = arith.constant 0 : index
      %c0_12 = arith.constant 0 : index
      %13 = vector.load %arg7[%c0_11, %c0_12] : memref<64x128xf32, #tpu.memory_space<vmem>>, vector<64x128xf32>
      tpu.vector_store %arg7[%c0_11, %c0_12], %12 {strides = array<i32>} : memref<64x128xf32, #tpu.memory_space<vmem>>, vector<64x128xf32>,
    } else {
    }
    %c0 = arith.constant 0 : index
    %c0_1 = arith.constant 0 : index
    %3 = vector.load %arg3[%c0, %c0_1] : memref<64x128xbf16, #tpu.memory_space<vmem>>, vector<64x128xbf16>
    %c0_2 = arith.constant 0 : index
    %c0_3 = arith.constant 0 : index
    %4 = vector.load %arg7[%c0_2, %c0_3] : memref<64x128xf32, #tpu.memory_space<vmem>>, vector<64x128xf32>
    %c0_4 = arith.constant 0 : index
    %c0_5 = arith.constant 0 : index
    %5 = vector.load %arg4[%c0_4, %c0_5] : memref<128x128xbf16, #tpu.memory_space<vmem>>, vector<128x128xbf16>
    %cst = arith.constant dense<0.000000e+00> : vector<64x128xf32>
    %6 = tpu.matmul %3, %5, %cst {dimension_numbers = #tpu.dot_dimension_numbers<[1], [0], [0], [1], [0, 0, 1, 1], [], []>} : vector<64x128xbf16>, vector<128x128xbf16>, vector<64x128xf32> -> vector<64x128xf32>
    %7 = arith.addf %4, %6 : vector<64x128xf32>
    %c0_6 = arith.constant 0 : index
    %c0_7 = arith.constant 0 : index
    %8 = vector.load %arg7[%c0_6, %c0_7] : memref<64x128xf32, #tpu.memory_space<vmem>>, vector<64x128xf32>
    tpu.vector_store %arg7[%c0_6, %c0_7], %7 {strides = array<i32>} : memref<64x128xf32, #tpu.memory_space<vmem>>, vector<64x128xf32>,
    %c0_i32_8 = arith.constant 0 : i32
    %9 = arith.cmpi eq, %arg2, %c0_i32_8 : i32
    %10 = arith.extui %9 : i1 to i32
    %c0_i32_9 = arith.constant 0 : i32
    %11 = arith.cmpi ne, %10, %c0_i32_9 : i32
    scf.if %11 {
      %c0_10 = arith.constant 0 : index
      %c0_11 = arith.constant 0 : index
      %12 = vector.load %arg7[%c0_10, %c0_11] : memref<64x128xf32, #tpu.memory_space<vmem>>, vector<64x128xf32>
      %c0_12 = arith.constant 0 : index
      %c0_13 = arith.constant 0 : index
      %13 = vector.load %arg5[%c0_12, %c0_13] : memref<1x128xf32, #tpu.memory_space<vmem>>, vector<1x128xf32>
      %14 = vector.broadcast %13 : vector<1x128xf32> to vector<64x128xf32>
      %15 = arith.addf %12, %14 : vector<64x128xf32>
      %16 = arith.mulf %15, %15 : vector<64x128xf32>
      %17 = arith.mulf %15, %16 : vector<64x128xf32>
      %cst_14 = arith.constant 4.471500e-02 : f32
      %18 = vector.broadcast %cst_14 : f32 to vector<64x128xf32>
      %19 = arith.mulf %18, %17 : vector<64x128xf32>
      %20 = arith.addf %15, %19 : vector<64x128xf32>
      %cst_15 = arith.constant 0.797884583 : f32
      %21 = vector.broadcast %cst_15 : f32 to vector<64x128xf32>
      %22 = arith.mulf %21, %20 : vector<64x128xf32>
      %23 = math.tanh %22 : vector<64x128xf32>
      %cst_16 = arith.constant 1.000000e+00 : f32
      %24 = vector.broadcast %cst_16 : f32 to vector<64x128xf32>
      %25 = arith.addf %24, %23 : vector<64x128xf32>
      %cst_17 = arith.constant 5.000000e-01 : f32
      %26 = vector.broadcast %cst_17 : f32 to vector<64x128xf32>
      %27 = arith.mulf %26, %25 : vector<64x128xf32>
      %28 = arith.mulf %15, %27 : vector<64x128xf32>
      %29 = arith.truncf %28 : vector<64x128xf32> to vector<64x128xbf16>
      %c0_18 = arith.constant 0 : index
      %c0_19 = arith.constant 0 : index
      %30 = vector.load %arg6[%c0_18, %c0_19] : memref<64x128xbf16, #tpu.memory_space<vmem>>, vector<64x128xbf16>
      tpu.vector_store %arg6[%c0_18, %c0_19], %29 {strides = array<i32>} : memref<64x128xbf16, #tpu.memory_space<vmem>>, vector<64x128xbf16>,
    } else {
    }
    return
  }
  func.func @transform_0(%arg0: i32, %arg1: i32, %arg2: i32) -> (i32, i32) {
    %c0_i32 = arith.constant 0 : i32
    return %arg0, %arg2 : i32, i32
  }
  func.func @transform_1(%arg0: i32, %arg1: i32, %arg2: i32) -> (i32, i32) {
    %c0_i32 = arith.constant 0 : i32
    return %arg2, %arg1 : i32, i32
  }
  func.func @transform_2(%arg0: i32, %arg1: i32, %arg2: i32) -> (i32, i32) {
    %c0_i32 = arith.constant 0 : i32
    %c0_i32_0 = arith.constant 0 : i32
    return %c0_i32, %arg1 : i32, i32
  }
  func.func @transform_3(%arg0: i32, %arg1: i32, %arg2: i32) -> (i32, i32) {
    %c0_i32 = arith.constant 0 : i32
    return %arg0, %arg1 : i32, i32
  }
}

</mosaic_0001>

<bundles_post_ra>
// kernel: tpu_custom_call.1
= control target key start
LH: loop header
LB: loop body
LE: loop exit
PB: predicated region body
PF: predicated region fallthrough
CT: control target
= control target key end

     0   :  { %8 = vsyncpa [#allocation4], 0  ;;  %s735_s0 = inlined_call_operand.hbm [shape: bf16[64,128], index: 0, kind: input, shape index: {}]   ;;  %s736_s1 = inlined_call_operand.hbm [shape: bf16[128,128], index: 1, kind: input, shape index: {}]   ;;  %s737_s2 = inlined_call_operand.vmem [shape: f32[1,128], index: 2, kind: input, shape index: {}]   ;;  %s738_s3 = inlined_call_operand.hbm [shape: bf16[64,128], index: 3, kind: output, shape index: {}]  }
   0x1   :  { %9 = vsyncpa [#allocation7], 0 }
   0x2   :  { %10 = vsyncpa [#allocation5], 0  ;;  %s606_s12 = smov [#allocation3]   ;;  %s534_s16 = scalar_lea.hbm %s735_s0, 512 }
   0x3   :  { %s16_s13 = sshll.u32 %s606_s12, 4  ;;  %p535_p0 = scmp.ne.s32.totalorder %s735_s0, %s534_s16  ;;  %s17_s13 = int_to_ptr.vmem [resolvable:$true] %s16_s13 }
   0x4   :  { %p538_p1 = scmp.lt.u32.totalorder %s534_s16, %s735_s0 }
   0x6   :  { %p540_p2 = pnand %p538_p1, %p535_p0 }
   0x8   :  { %543 = shalt.err (!%p540_p2)
}
   0x9   :  { %s544_s21 = scalar_lea.vmem %s17_s13, 512  ;;  %p549_p4 = scmp.lt.s32.totalorder %s17_s13, %s17_s13 }
   0xa   :  { %p545_p3 = scmp.ne.s32.totalorder %s17_s13, %s544_s21  ;;  %p550_p5 = scmp.lt.s32.totalorder %s544_s21, %s544_s21 }
   0xc   :  { %p551_p6 = por %p550_p5, %p549_p4 }
   0xe   :  { %p552_p7 = pnand %p551_p6, %p545_p3 }
  0x10   :  { %555 = shalt.err (!%p552_p7)
}
  0x11   :  { %s607_s22 = smov 64   ;;  %s608_s23 = smov 4  }
  0x12   :  { %22 = dma.hbm_to_vmem [thread:$0]  %s735_s0, 512, %s17_s13, [#allocation4], %s607_s22, %s607_s22, %s608_s23  }
  0x13   :  { %s609_s26 = smov [#allocation6]   ;;  %s556_s30 = scalar_lea.hbm %s736_s1, 1024 }
  0x14   :  { %s28_s27 = sshll.u32 %s609_s26, 4  ;;  %p557_p8 = scmp.ne.s32.totalorder %s736_s1, %s556_s30  ;;  %s29_s27 = int_to_ptr.vmem [resolvable:$true] %s28_s27 }
  0x15   :  { %p560_p9 = scmp.lt.u32.totalorder %s556_s30, %s736_s1 }
  0x17   :  { %p562_p10 = pnand %p560_p9, %p557_p8 }
  0x19   :  { %565 = shalt.err (!%p562_p10)
}
  0x1a   :  { %s566_s8 = scalar_lea.vmem %s29_s27, 1024  ;;  %p571_p12 = scmp.lt.s32.totalorder %s29_s27, %s29_s27 }
  0x1b   :  { %p567_p11 = scmp.ne.s32.totalorder %s29_s27, %s566_s8  ;;  %p572_p13 = scmp.lt.s32.totalorder %s566_s8, %s566_s8 }
  0x1d   :  { %p573_p0 = por %p572_p13, %p571_p12 }
  0x1f   :  { %p574_p1 = pnand %p573_p0, %p567_p11 }
  0x21   :  { %577 = shalt.err (!%p574_p1)
}
  0x22   :  { %34 = dma.hbm_to_vmem [thread:$0]  %s736_s1, 1024, %s29_s27, [#allocation7], %s607_s22, %s607_s22, %s608_s23  }
  0x23   :  { %600 = dma.done.wait [#allocation4], 512  }
  0x24   :  { %601 = vsyncadd [#allocation4], 4294966784 }
  0x25   :  { %602 = dma.done.wait [#allocation7], 1024  }
  0x26   :  { %603 = vsyncadd [#allocation7], 4294966272  ;;  %v506_v0 = vld [vmem:[#allocation6] sm:$0xff]   ;;  %v507_v1 = vld [vmem:[#allocation6 + $0x8] sm:$0xff]  }
  0x27   :  { %461 = vmatprep.subr.bf16.mxu0 %v506_v0  ;;  %485 = vmatprep.subr.bf16.mxu1 %v506_v0  ;;  %v508_v2 = vld [vmem:[#allocation6 + $0x10] sm:$0xff]   ;;  %v509_v3 = vld [vmem:[#allocation6 + $0x18] sm:$0xff]   ;;  %v514_v4 = vld [vmem:[#allocation3] sm:$0xff]  }
  0x28   :  { %462 = vmatpush3.bf16.msra.mxu0 %v506_v0  ;;  %493 = vmatpush3.bf16.msra.mxu1 %v506_v0  ;;  %v515_v5 = vld [vmem:[#allocation3 + $0x10] sm:$0xff]   ;;  %v510_v6 = vld [vmem:[#allocation6 + $0x20] sm:$0xff]   ;;  %v511_v7 = vld [vmem:[#allocation6 + $0x28] sm:$0xff]  }
  0x29   :  { %463 = vmatprep.subr.bf16.mxu0 %v507_v1  ;;  %486 = vmatprep.subr.bf16.mxu1 %v507_v1  ;;  %v512_v8 = vld [vmem:[#allocation6 + $0x30] sm:$0xff]   ;;  %v513_v9 = vld [vmem:[#allocation6 + $0x38] sm:$0xff]   ;;  %v516_v10 = vld [vmem:[#allocation3 + $0x8] sm:$0xff]  }
  0x2a   :  { %477 = vmatprep.mubr.bf16.mxu0 %v514_v4  ;;  %481 = vmatprep.mubr.bf16.mxu1 %v515_v5  ;;  %v517_v11 = vld [vmem:[#allocation3 + $0x18] sm:$0xff]   ;;  %v409_v12 = vld [vmem:[%s737_s2] ss:$0 sm:$0xff]  ;;  %s610_s2 = smov [#allocation8]  }
  0x2b   :  { %s384_s11 = sshll.u32 %s610_s2, 4  ;;  %s385_s11 = int_to_ptr.vmem [resolvable:$true] %s384_s11 }
  0x2c   :  { %464 = vmatpush3.bf16.msra.mxu0 %v507_v1  ;;  %494 = vmatpush3.bf16.msra.mxu1 %v507_v1  ;;  %s578_s12 = scalar_lea.vmem %s385_s11, 512  ;;  %p583_p3 = scmp.lt.s32.totalorder %s385_s11, %s385_s11 }
  0x2d   :  { %465 = vmatprep.subr.bf16.mxu0 %v508_v2  ;;  %487 = vmatprep.subr.bf16.mxu1 %v508_v2  ;;  %p579_p2 = scmp.ne.s32.totalorder %s385_s11, %s578_s12  ;;  %p584_p4 = scmp.lt.s32.totalorder %s578_s12, %s578_s12 }
  0x2f   :  { %p585_p5 = por %p584_p4, %p583_p3 }
  0x30   :  { %466 = vmatpush3.bf16.msra.mxu0 %v508_v2  ;;  %495 = vmatpush3.bf16.msra.mxu1 %v508_v2 }
  0x31   :  { %467 = vmatprep.subr.bf16.mxu0 %v509_v3  ;;  %488 = vmatprep.subr.bf16.mxu1 %v509_v3  ;;  %p586_p6 = pnand %p585_p5, %p579_p2 }
  0x34   :  { %468 = vmatpush3.bf16.msra.mxu0 %v509_v3  ;;  %496 = vmatpush3.bf16.msra.mxu1 %v509_v3 }
  0x35   :  { %469 = vmatprep.subr.bf16.mxu0 %v510_v6  ;;  %489 = vmatprep.subr.bf16.mxu1 %v510_v6 }
  0x38   :  { %470 = vmatpush3.bf16.msra.mxu0 %v510_v6  ;;  %497 = vmatpush3.bf16.msra.mxu1 %v510_v6 }
  0x39   :  { %471 = vmatprep.subr.bf16.mxu0 %v511_v7  ;;  %490 = vmatprep.subr.bf16.mxu1 %v511_v7 }
  0x3c   :  { %472 = vmatpush3.bf16.msra.mxu0 %v511_v7  ;;  %498 = vmatpush3.bf16.msra.mxu1 %v511_v7 }
  0x3d   :  { %473 = vmatprep.subr.bf16.mxu0 %v512_v8  ;;  %491 = vmatprep.subr.bf16.mxu1 %v512_v8 }
  0x40   :  { %474 = vmatpush3.bf16.msra.mxu0 %v512_v8  ;;  %499 = vmatpush3.bf16.msra.mxu1 %v512_v8 }
  0x41   :  { %475 = vmatprep.subr.bf16.mxu0 %v513_v9  ;;  %492 = vmatprep.subr.bf16.mxu1 %v513_v9 }
  0x44   :  { %476 = vmatpush3.bf16.msra.mxu0 %v513_v9  ;;  %500 = vmatpush3.bf16.msra.mxu1 %v513_v9 }
  0x47   :  { %478 = vmatmul.mubr.bf16.vlgmr.msra.gmra.mrb[0].mxu0 %v516_v10  ;;  %482 = vmatmul.mubr.bf16.vlgmr.msra.gmra.mrb[0].mxu1 %v517_v11 }
 0x11a   :  { %v479_v13 = vpop.f32.mrb[0].mxu0  ;;  %v483_v14 = vpop.f32.mrb[0].mxu1 }
 0x11b   :  { %v664_v15 = vadd.f32 %v479_v13, %v409_v12  ;;  %v666_v16 = vadd.f32 %v483_v14, %v409_v12  ;;  %v194_v17 = vpop.f32.mrb[1].mxu0  ;;  %v210_v18 = vpop.f32.mrb[1].mxu1 }
 0x11c   :  { %v668_v19 = vadd.f32 %v409_v12, %v194_v17  ;;  %v670_v20 = vadd.f32 %v409_v12, %v210_v18  ;;  %v480_v21 = vpop.f32.mrb[2].mxu0  ;;  %v484_v22 = vpop.f32.mrb[2].mxu1 }
 0x11d   :  { %v269_v23 = vmul.f32 %v664_v15, %v664_v15  ;;  %v273_v24 = vmul.f32 %v666_v16, %v666_v16  ;;  %v676_v25 = vadd.f32 %v480_v21, %v409_v12  ;;  %v678_v26 = vadd.f32 %v484_v22, %v409_v12  ;;  %v197_v27 = vpop.f32.mrb[3].mxu0  ;;  %v213_v28 = vpop.f32.mrb[3].mxu1 }
 0x11e   :  { %v267_v29 = vmul.f32 %v668_v19, %v668_v19  ;;  %v271_v30 = vmul.f32 %v670_v20, %v670_v20  ;;  %v684_v31 = vadd.f32 %v409_v12, %v197_v27  ;;  %v686_v32 = vadd.f32 %v409_v12, %v213_v28 }
 0x11f   :  { %v277_v33 = vmul.f32 %v269_v23, %v664_v15  ;;  %v281_v34 = vmul.f32 %v273_v24, %v666_v16  ;;  %v270_v35 = vmul.f32 %v676_v25, %v676_v25  ;;  %v274_v36 = vmul.f32 %v678_v26, %v678_v26 }
 0x120   :  { %v275_v37 = vmul.f32 %v267_v29, %v668_v19  ;;  %v279_v38 = vmul.f32 %v271_v30, %v670_v20  ;;  %v268_v39 = vmul.f32 %v684_v31, %v684_v31  ;;  %v272_v40 = vmul.f32 %v686_v32, %v686_v32 }
 0x121   :  { %v285_v41 = vmul.f32 0.044715, %v277_v33  ;;  %v289_v42 = vmul.f32 0.044715, %v281_v34  ;;  %v278_v43 = vmul.f32 %v270_v35, %v676_v25  ;;  %v282_v44 = vmul.f32 %v274_v36, %v678_v26 }
 0x122   :  { %v283_v45 = vmul.f32 0.044715, %v275_v37  ;;  %v287_v46 = vmul.f32 0.044715, %v279_v38  ;;  %v276_v47 = vmul.f32 %v268_v39, %v684_v31  ;;  %v280_v48 = vmul.f32 %v272_v40, %v686_v32 }
 0x123   :  { %v293_v49 = vadd.f32 %v285_v41, %v664_v15  ;;  %v297_v50 = vadd.f32 %v289_v42, %v666_v16  ;;  %v286_v51 = vmul.f32 0.044715, %v278_v43  ;;  %v290_v52 = vmul.f32 0.044715, %v282_v44 }
 0x124   :  { %v291_v53 = vadd.f32 %v283_v45, %v668_v19  ;;  %v295_v54 = vadd.f32 %v287_v46, %v670_v20  ;;  %v284_v55 = vmul.f32 0.044715, %v276_v47  ;;  %v288_v56 = vmul.f32 0.044715, %v280_v48 }
 0x125   :  { %v301_v57 = vmul.f32 0.7978846, %v293_v49  ;;  %v305_v58 = vmul.f32 0.7978846, %v297_v50  ;;  %v294_v59 = vadd.f32 %v286_v51, %v676_v25  ;;  %v298_v60 = vadd.f32 %v290_v52, %v678_v26 }
 0x126   :  { %v299_v61 = vmul.f32 0.7978846, %v291_v53  ;;  %v303_v62 = vmul.f32 0.7978846, %v295_v54  ;;  %v292_v63 = vadd.f32 %v284_v55, %v684_v31  ;;  %v296_v0 = vadd.f32 %v288_v56, %v686_v32 }
 0x127   :  { %518 = vtanh.f32 %v301_v57  ;;  %v302_v1 = vmul.f32 0.7978846, %v294_v59  ;;  %v306_v2 = vmul.f32 0.7978846, %v298_v60 }
 0x128   :  { %520 = vtanh.f32 %v305_v58  ;;  %v300_v3 = vmul.f32 0.7978846, %v292_v63  ;;  %v304_v4 = vmul.f32 0.7978846, %v296_v0 }
 0x129   :  { %522 = vtanh.f32 %v299_v61 }
 0x12a   :  { %524 = vtanh.f32 %v303_v62 }
 0x12b   :  { %526 = vtanh.f32 %v302_v1 }
 0x12c   :  { %528 = vtanh.f32 %v306_v2 }
 0x12d   :  { %530 = vtanh.f32 %v300_v3 }
 0x12e   :  { %532 = vtanh.f32 %v304_v4 }
 0x131   :  { %v519_v5 = vpop.eup %518 }
 0x132   :  { %v521_v6 = vpop.eup %520  ;;  %v317_v7 = vadd.f32 1.0, %v519_v5 }
 0x133   :  { %v523_v8 = vpop.eup %522  ;;  %v321_v9 = vadd.f32 1.0, %v521_v6 }
 0x134   :  { %v525_v10 = vpop.eup %524  ;;  %v315_v11 = vadd.f32 1.0, %v523_v8  ;;  %v325_v17 = vmul.f32 0.5, %v317_v7 }
 0x135   :  { %v527_v12 = vpop.eup %526  ;;  %v319_v13 = vadd.f32 1.0, %v525_v10  ;;  %v329_v22 = vmul.f32 0.5, %v321_v9 }
 0x136   :  { %v529_v14 = vpop.eup %528  ;;  %v318_v18 = vadd.f32 1.0, %v527_v12  ;;  %v323_v27 = vmul.f32 0.5, %v315_v11  ;;  %v333_v35 = vmul.f32 %v325_v17, %v664_v15 }
 0x137   :  { %v531_v21 = vpop.eup %530  ;;  %v322_v23 = vadd.f32 1.0, %v529_v14  ;;  %v327_v30 = vmul.f32 0.5, %v319_v13  ;;  %v337_v38 = vmul.f32 %v329_v22, %v666_v16 }
 0x138   :  { %v533_v24 = vpop.eup %532  ;;  %v326_v28 = vmul.f32 0.5, %v318_v18  ;;  %v316_v29 = vadd.f32 1.0, %v531_v21  ;;  %v331_v41 = vmul.f32 %v323_v27, %v668_v19 }
 0x139   :  { %v330_v33 = vmul.f32 0.5, %v322_v23  ;;  %v320_v34 = vadd.f32 1.0, %v533_v24  ;;  %v335_v44 = vmul.f32 %v327_v30, %v670_v20 }
 0x13a   :  { %v334_v36 = vmul.f32 %v326_v28, %v676_v25  ;;  %v324_v37 = vmul.f32 0.5, %v316_v29 }
 0x13b   :  { %v338_v39 = vmul.f32 %v330_v33, %v678_v26  ;;  %v328_v40 = vmul.f32 0.5, %v320_v34 }
 0x13c   :  { %v332_v42 = vmul.f32 %v324_v37, %v684_v31  ;;  %v434_v43 = vpack.c.bf16 %v334_v36, %v333_v35 }
 0x13d   :  { %v336_v45 = vmul.f32 %v328_v40, %v686_v32  ;;  %v444_v15 = vpack.c.bf16 %v338_v39, %v337_v38 }
 0x13e   :  { %v429_v46 = vpack.c.bf16 %v332_v42, %v331_v41  ;;  %446 = vst [vmem:[#allocation8 + $0x8] sm:$0xff] %v434_v43  }
 0x13f   :  { %v439_v25 = vpack.c.bf16 %v336_v45, %v335_v44  ;;  %448 = vst [vmem:[#allocation8 + $0x18] sm:$0xff] %v444_v15  }
 0x140   :  { %430 = vst [vmem:[#allocation8] sm:$0xff] %v429_v46  }
 0x141   :  { %447 = vst [vmem:[#allocation8 + $0x10] sm:$0xff] %v439_v25  }
 0x142   :  { %589 = shalt.err (!%p586_p6)
}
 0x143   :  { %s590_s15 = scalar_lea.hbm %s738_s3, 512 }
 0x144   :  { %p591_p7 = scmp.ne.s32.totalorder %s738_s3, %s590_s15  ;;  %p594_p8 = scmp.lt.u32.totalorder %s590_s15, %s738_s3 }
 0x146   :  { %p596_p9 = pnand %p594_p8, %p591_p7 }
 0x148   :  { %599 = shalt.err (!%p596_p9)
}
 0x149   :  { %390 = dma.vmem_to_hbm [thread:$0]  %s385_s11, 512, %s738_s3, [#allocation5], %s607_s22, %s607_s22, %s608_s23  }
 0x14a   :  { %604 = dma.done.wait [#allocation5], 512  }
 0x14b   :  { %605 = vsyncadd [#allocation5], 4294966784 }
 0x14c   :  { %394 = vsyncpa [#allocation4], 1 }
 0x14d   :  { %395 = vsyncpa [#allocation7], 1 }
 0x14e   :  { %396 = vsyncpa [#allocation5], 1 }

</bundles_post_ra>
